<compile_context>
chip_gen: v7x
topology: tpu7x:2x2x1
jax: 0.10.0
libtpu: 0.0.40
codegen_flags: <defaults>
</compile_context>

<pallas_src>
import jax
import jax.numpy as jnp
from jax.experimental import pallas as pl
from jax.experimental.pallas import tpu as pltpu

_HID = 100           # per-head hidden width
_H2 = 2 * _HID       # fused hidden width (both heads)
_IN_ROWS = 16        # feature-major input rows (sublane-tile padded layout)
_OUT_ROWS = 9        # feature-major output rows: x1(3) x2(3) l1_2 l2_2 ones


def _relu6(x):
    return jnp.minimum(jnp.maximum(x, 0.0), 6.0)


def _round_up(n, m):
    return ((n + m - 1) // m) * m


def _choose_tile_b(b_pad, target):
    """Largest multiple of 128 dividing b_pad, <= target, preferring grid >= 2."""
    target = max(128, (int(target) // 128) * 128)
    limit = min(b_pad, target)
    divs = [t for t in range(128, limit + 1, 128) if b_pad % t == 0]
    multi = [t for t in divs if b_pad // t >= 2]       # keep both v7x TCs busy
    if multi:
        return multi[-1]
    return divs[-1] if divs else 128


def mylinear2_kernel(x_ref, w1_ref, w2_ref, b2_ref, o_ref):
    """One batch tile, feature-major (batch on the 128-lane axis).

    x_ref : (16, TILE_B) f32
            rows 0:3 = x1, 3:6 = x2, row 6 = 1 (bias lane), row 7 = 0
            rows 8:11 = l_out, 11:14 = l_out, row 14 = 1, row 15 = 0
    w1    : (200, 8)  block-diag [[w11^T,0,b11,0],[0,w21^T,b21,0]]  (bf16/f32)
    w2    : (2, 200)  block-diag [w12^T,0 ; 0,w22^T]                (bf16/f32)
    b2    : (2, 1)    f32
    o_ref : (9, TILE_B) f32: rows 0:6 passthrough x1,x2; 6:8 heads; row 8 = 1
    """
    top = x_ref[0:8, :]                       # full 8-row sublane tile (unmasked)
    bot = x_ref[8:16, :]                      # full 8-row sublane tile (unmasked)

    # Single fused layer-1 RHS: rows 0:6 = [x1;x2]*l_out, row 6 = 1 (bias), row 7 = 0.
    rhs = (top * bot).astype(w1_ref.dtype)    # (8, TILE_B)

    # Fused layer 1 (bias folded into the matmul), f32 accumulation on the MXU.
    h = jnp.dot(w1_ref[...], rhs, preferred_element_type=jnp.float32)   # (200, T)
    h = _relu6(h).astype(w2_ref.dtype)

    # Fused layer 2: (2, 200) @ (200, TILE_B).
    y = jnp.dot(w2_ref[...], h, preferred_element_type=jnp.float32) + b2_ref[...]
    y = _relu6(y)                              # (2, TILE_B) f32

    # Full output assembled in-kernel (kills the XLA concat pass).
    o_ref[0:6, :] = top[0:6, :]                # passthrough x1, x2 (exact f32)
    o_ref[6:8, :] = y                          # l1_2, l2_2
    o_ref[8:9, :] = jnp.ones_like(y[0:1, :])   # ones column


def _fuse_params(params, dtype):
    """Build feature-major fused/block-diagonal weights from the 4 nn.Linear params."""
    (w11, b11, w21, b21, w12, b12, w22, b22) = params
    w1 = jnp.zeros((_H2, 8), jnp.float32)
    w1 = w1.at[0:_HID, 0:3].set(w11.T)                    # head 1, cols 0:3
    w1 = w1.at[_HID:_H2, 3:6].set(w21.T)                  # head 2, cols 3:6
    w1 = w1.at[0:_HID, 6].set(b11.reshape(-1))            # bias lane (col 6)
    w1 = w1.at[_HID:_H2, 6].set(b21.reshape(-1))
    w2 = jnp.zeros((2, _H2), jnp.float32)
    w2 = w2.at[0, 0:_HID].set(w12.reshape(-1))
    w2 = w2.at[1, _HID:_H2].set(w22.reshape(-1))
    b2 = jnp.concatenate([b12.reshape(1, 1), b22.reshape(1, 1)], axis=0)  # (2,1)
    return w1.astype(dtype), w2.astype(dtype), b2.astype(jnp.float32)


def mylinear2_forward(x, params, *, tile_b=8192, use_bf16=True):
    """x: (B, 9) float32 -> (B, 9) float32, same semantics as MyLinear2.forward."""
    B = x.shape[0]
    x = x.astype(jnp.float32)

    b_pad = _round_up(B, 128)
    tile_b = _choose_tile_b(b_pad, tile_b)
    grid = (b_pad // tile_b,)

    w_dtype = jnp.bfloat16 if use_bf16 else jnp.float32
    w1, w2, b2 = _fuse_params(params, w_dtype)

    # Feature-major (lane-dense) input layout, padded to 16 sublane rows so the
    # kernel reads two clean 8-row tiles; l_out is written twice and the ones
    # lane folds the layer-1 bias into the matmul.
    onesB = jnp.ones((B, 1), jnp.float32)
    zerosB = jnp.zeros((B, 1), jnp.float32)
    lout = x[:, 6:9]
    xr = jnp.concatenate(
        [x[:, 0:6], onesB, zerosB, lout, lout, onesB, zerosB], axis=1)   # (B, 16)
    xt = jnp.pad(xr.T, ((0, 0), (0, b_pad - B)))                         # (16, b_pad)

    # VMEM budget: double-buffered in/out tiles + f32/bf16 hidden intermediates.
    budget = (2 * _IN_ROWS * tile_b * 4 + 2 * _OUT_ROWS * tile_b * 4
              + tile_b * (8 * 6 + _H2 * 6) + (1 << 20))
    vmem_limit = int(min(max(32 << 20, 2 * budget), 48 << 20))  # <= ~48 MiB for v7x

    cost = pl.CostEstimate(
        flops=2 * b_pad * (_H2 * 8 + 2 * _H2),
        transcendentals=0,
        bytes_accessed=4 * b_pad * (_IN_ROWS + _OUT_ROWS) + _H2 * 8 * 4 + _H2 * 2 * 4,
    )

    out_t = pl.pallas_call(
        mylinear2_kernel,
        out_shape=jax.ShapeDtypeStruct((_OUT_ROWS, b_pad), jnp.float32),
        grid_spec=pltpu.PrefetchScalarGridSpec(
            num_scalar_prefetch=0,
            grid=grid,
            in_specs=[
                pl.BlockSpec((_IN_ROWS, tile_b), lambda i: (0, i)),  # x tile (pipelined)
                pl.BlockSpec((_H2, 8), lambda i: (0, 0)),            # w1 (resident)
                pl.BlockSpec((2, _H2), lambda i: (0, 0)),            # w2 (resident)
                pl.BlockSpec((2, 1), lambda i: (0, 0)),              # b2 (resident)
            ],
            out_specs=pl.BlockSpec((_OUT_ROWS, tile_b), lambda i: (0, i)),
        ),
        compiler_params=pltpu.CompilerParams(
            dimension_semantics=("parallel",),   # shard batch grid over TCs (v7x)
            vmem_limit_bytes=vmem_limit,
        ),
        cost_estimate=cost,
    )(xt, w1, w2, b2)

    # Padded batch columns hold garbage; they are sliced off here.
    return out_t[:, :B].T                                        # (B, 9)


def init_params(key):
    """Deterministic init mimicking nn.Linear default: U(-1/sqrt(fan_in), +...)."""
    def linear(key, fan_in, fan_out):
        kw, kb = jax.random.split(key)
        bound = 1.0 / jnp.sqrt(float(fan_in))
        # stored as (in, out) so the reference computes x @ W
        w = jax.random.uniform(kw, (fan_in, fan_out), jnp.float32, -bound, bound)
        b = jax.random.uniform(kb, (1, fan_out), jnp.float32, -bound, bound)
        return w, b

    k1, k2, k3, k4 = jax.random.split(key, 4)
    w11, b11 = linear(k1, 3, _HID)    # hidden1_1
    w21, b21 = linear(k2, 3, _HID)    # hidden2_1
    w12, b12 = linear(k3, _HID, 1)    # hidden1_2
    w22, b22 = linear(k4, _HID, 1)    # hidden2_2
    return (w11, b11, w21, b21, w12, b12, w22, b22)


def reference_forward(x, params):
    """Pure-JAX reference of the PyTorch forward, for a sanity check."""
    (w11, b11, w21, b21, w12, b12, w22, b22) = params
    x1, x2, l_out = x[:, 0:3], x[:, 3:6], x[:, 6:9]
    l1_1 = _relu6((x1 * l_out) @ w11 + b11)
    l2_1 = _relu6((x2 * l_out) @ w21 + b21)
    l1_2 = _relu6(l1_1 @ w12 + b12)
    l2_2 = _relu6(l2_1 @ w22 + b22)
    ones = jnp.ones((x.shape[0], 1), jnp.float32)
    return jnp.concatenate([x1, x2, l1_2, l2_2, ones], axis=1)


if __name__ == "__main__":
    key = jax.random.PRNGKey(0)
    kx, kx2, kp = jax.random.split(key, 3)
    params = init_params(kp)

    # Small case, f32 path (single tile, padded batch): bit-tight check.
    B = 8
    x = jax.random.normal(kx, (B, 9), jnp.float32)
    out = jax.block_until_ready(mylinear2_forward(x, params, use_bf16=False))
    ref = reference_forward(x, params)
    assert out.shape == (B, 9)
    assert jnp.allclose(out, ref, atol=1e-5, rtol=1e-5)

    # Multi-tile case (grid > 1, ragged batch) on the default bf16 fast path.
    B2 = 300
    x2 = jax.random.normal(kx2, (B2, 9), jnp.float32)
    out2 = jax.block_until_ready(mylinear2_forward(x2, params, tile_b=128, use_bf16=True))
    ref2 = reference_forward(x2, params)
    assert out2.shape == (B2, 9)
    # bf16 matmul operands -> looser tolerance (passthrough columns stay exact).
    assert jnp.allclose(out2[:, 0:6], ref2[:, 0:6])
    assert jnp.allclose(out2, ref2, atol=5e-2, rtol=5e-2)

    print("KERNEL_OK")
</pallas_src>

<mosaic_0001>
module attributes {stable_mosaic.version = 11 : i64} {
  func.func @mylinear2_kernel(%arg0: i32, %arg1: memref<16x128xf32, #tpu.memory_space<vmem>>, %arg2: memref<200x8xf32, #tpu.memory_space<vmem>>, %arg3: memref<2x200xf32, #tpu.memory_space<vmem>>, %arg4: memref<2x1xf32, #tpu.memory_space<vmem>>, %arg5: memref<9x128xf32, #tpu.memory_space<vmem>>) attributes {dimension_semantics = [#tpu.dimension_semantics<parallel>], iteration_bounds = array<i64: 1>, scalar_prefetch = 0 : i64, scratch_operands = 0 : i64, tpu.core_type = #tpu.core_type<tc>, window_params = [{transform_indices = @transform_0, window_bounds = array<i64: 16, 128>}, {pipeline_mode = #tpu.pipeline_mode<synchronous>, transform_indices = @transform_1, window_bounds = array<i64: 200, 8>}, {pipeline_mode = #tpu.pipeline_mode<synchronous>, transform_indices = @transform_2, window_bounds = array<i64: 2, 200>}, {pipeline_mode = #tpu.pipeline_mode<synchronous>, transform_indices = @transform_3, window_bounds = array<i64: 2, 1>}, {transform_indices = @transform_4, window_bounds = array<i64: 9, 128>}]} {
    %c0 = arith.constant 0 : index
    %c0_0 = arith.constant 0 : index
    %0 = vector.load %arg1[%c0, %c0_0] : memref<16x128xf32, #tpu.memory_space<vmem>>, vector<8x128xf32>
    %c8 = arith.constant 8 : index
    %c0_1 = arith.constant 0 : index
    %1 = vector.load %arg1[%c8, %c0_1] : memref<16x128xf32, #tpu.memory_space<vmem>>, vector<8x128xf32>
    %2 = arith.mulf %0, %1 : vector<8x128xf32>
    %c0_2 = arith.constant 0 : index
    %c0_3 = arith.constant 0 : index
    %3 = vector.load %arg2[%c0_2, %c0_3] : memref<200x8xf32, #tpu.memory_space<vmem>>, vector<200x8xf32>
    %cst = arith.constant dense<0.000000e+00> : vector<200x128xf32>
    %4 = tpu.matmul %3, %2, %cst {dimension_numbers = #tpu.dot_dimension_numbers<[1], [0], [0], [1], [0, 0, 1, 1], [], []>} : vector<200x8xf32>, vector<8x128xf32>, vector<200x128xf32> -> vector<200x128xf32>
    %cst_4 = arith.constant 0.000000e+00 : f32
    %5 = vector.broadcast %cst_4 : f32 to vector<200x128xf32>
    %6 = arith.maximumf %4, %5 : vector<200x128xf32>
    %cst_5 = arith.constant 6.000000e+00 : f32
    %7 = vector.broadcast %cst_5 : f32 to vector<200x128xf32>
    %8 = arith.minimumf %6, %7 : vector<200x128xf32>
    %c0_6 = arith.constant 0 : index
    %c0_7 = arith.constant 0 : index
    %9 = vector.load %arg3[%c0_6, %c0_7] : memref<2x200xf32, #tpu.memory_space<vmem>>, vector<2x200xf32>
    %cst_8 = arith.constant dense<0.000000e+00> : vector<2x128xf32>
    %10 = tpu.matmul %9, %8, %cst_8 {dimension_numbers = #tpu.dot_dimension_numbers<[1], [0], [0], [1], [0, 0, 1, 1], [], []>} : vector<2x200xf32>, vector<200x128xf32>, vector<2x128xf32> -> vector<2x128xf32>
    %c0_9 = arith.constant 0 : index
    %c0_10 = arith.constant 0 : index
    %11 = vector.load %arg4[%c0_9, %c0_10] : memref<2x1xf32, #tpu.memory_space<vmem>>, vector<2x1xf32>
    %12 = vector.broadcast %11 : vector<2x1xf32> to vector<2x128xf32>
    %13 = arith.addf %10, %12 : vector<2x128xf32>
    %cst_11 = arith.constant 0.000000e+00 : f32
    %14 = vector.broadcast %cst_11 : f32 to vector<2x128xf32>
    %15 = arith.maximumf %13, %14 : vector<2x128xf32>
    %cst_12 = arith.constant 6.000000e+00 : f32
    %16 = vector.broadcast %cst_12 : f32 to vector<2x128xf32>
    %17 = arith.minimumf %15, %16 : vector<2x128xf32>
    %18 = vector.extract_strided_slice %0 {offsets = [0, 0], sizes = [6, 128], strides = [1, 1]} : vector<8x128xf32> to vector<6x128xf32>
    %c0_13 = arith.constant 0 : index
    %c0_14 = arith.constant 0 : index
    %19 = vector.load %arg5[%c0_13, %c0_14] : memref<9x128xf32, #tpu.memory_space<vmem>>, vector<6x128xf32>
    tpu.vector_store %arg5[%c0_13, %c0_14], %18 {strides = array<i32>} : memref<9x128xf32, #tpu.memory_space<vmem>>, vector<6x128xf32>,
    %c6 = arith.constant 6 : index
    %c0_15 = arith.constant 0 : index
    %20 = vector.load %arg5[%c6, %c0_15] : memref<9x128xf32, #tpu.memory_space<vmem>>, vector<2x128xf32>
    tpu.vector_store %arg5[%c6, %c0_15], %17 {strides = array<i32>} : memref<9x128xf32, #tpu.memory_space<vmem>>, vector<2x128xf32>,
    %cst_16 = arith.constant 1.000000e+00 : f32
    %21 = vector.broadcast %cst_16 : f32 to vector<1x128xf32>
    %c8_17 = arith.constant 8 : index
    %c0_18 = arith.constant 0 : index
    %22 = vector.load %arg5[%c8_17, %c0_18] : memref<9x128xf32, #tpu.memory_space<vmem>>, vector<1x128xf32>
    tpu.vector_store %arg5[%c8_17, %c0_18], %21 {strides = array<i32>} : memref<9x128xf32, #tpu.memory_space<vmem>>, vector<1x128xf32>,
    return
  }
  func.func @transform_0(%arg0: i32) -> (i32, i32) {
    %c0_i32 = arith.constant 0 : i32
    %c0_i32_0 = arith.constant 0 : i32
    return %c0_i32, %arg0 : i32, i32
  }
  func.func @transform_1(%arg0: i32) -> (i32, i32) {
    %c0_i32 = arith.constant 0 : i32
    %c0_i32_0 = arith.constant 0 : i32
    %c0_i32_1 = arith.constant 0 : i32
    return %c0_i32, %c0_i32_0 : i32, i32
  }
  func.func @transform_2(%arg0: i32) -> (i32, i32) {
    %c0_i32 = arith.constant 0 : i32
    %c0_i32_0 = arith.constant 0 : i32
    %c0_i32_1 = arith.constant 0 : i32
    return %c0_i32, %c0_i32_0 : i32, i32
  }
  func.func @transform_3(%arg0: i32) -> (i32, i32) {
    %c0_i32 = arith.constant 0 : i32
    %c0_i32_0 = arith.constant 0 : i32
    %c0_i32_1 = arith.constant 0 : i32
    return %c0_i32, %c0_i32_0 : i32, i32
  }
  func.func @transform_4(%arg0: i32) -> (i32, i32) {
    %c0_i32 = arith.constant 0 : i32
    %c0_i32_0 = arith.constant 0 : i32
    return %c0_i32, %arg0 : i32, i32
  }
}

</mosaic_0001>

<bundles_post_ra>
// kernel: tpu_custom_call.1
= control target key start
LH: loop header
LB: loop body
LE: loop exit
PB: predicated region body
PF: predicated region fallthrough
CT: control target
= control target key end

     0   :  { %v672_v2 = vmov 0.0   ;;  %vm673_vm0 = vmmov 0   ;;  %vm46_vm1 = vcmask 64512   ;;  %s898_s0 = inlined_call_operand.vmem [shape: f32[16,128], index: 0, kind: input, shape index: {}]   ;;  %s899_s1 = inlined_call_operand.vmem [shape: f32[200,8], index: 1, kind: input, shape index: {}]   ;;  %s900_s2 = inlined_call_operand.vmem [shape: f32[2,200], index: 2, kind: input, shape index: {}]   ;;  %s901_s3 = inlined_call_operand.vmem [shape: f32[2,1], index: 3, kind: input, shape index: {}]   ;;  %s902_s4 = inlined_call_operand.hbm [shape: f32[9,128], index: 4, kind: output, shape index: {}]  }
   0x1   :  { %v18_v0 = vld [vmem:[%s898_s0] sm:$0xff]  ;;  %v19_v1 = vld [vmem:[%s898_s0 + $0x8] sm:$0xff]  ;;  %526 = vmatprep.subr.mxu0 %v672_v2  ;;  %528 = vmatprep.mubr.msk.f32.mxu0 %vm673_vm0, %v672_v2  ;;  %v23_v6 = vld [vmem:[%s899_s1 + $0x10] sm:$0xff] }
   0x2   :  { %v20_v3 = vmul.f32 %v19_v1, %v18_v0  ;;  %454 = vst [vmem:[#allocation2] sm:$0x3f] %v18_v0  ;;  %v21_v4 = vld [vmem:[%s899_s1] sm:$0xff]  ;;  %v22_v5 = vld [vmem:[%s899_s1 + $0x8] sm:$0xff] }
   0x4   :  { %527 = vmatpush3.msra.mxu0 %v20_v3 }
   0x5   :  { %529 = vmatmul.mubr.msk.f32.vlgmr.msra.gmra.mrb[0].mxu0 %vm46_vm1, %v21_v4 }
   0x6   :  { %531 = vmatprep.mubr.msk.f32.mxu0 %vm673_vm0, %v672_v2 }
   0x9   :  { %532 = vmatmul.mubr.msk.f32.gmra.mrb[2].mxu0 %vm46_vm1, %v22_v5 }
   0xa   :  { %534 = vmatprep.mubr.msk.f32.mxu0 %vm673_vm0, %v672_v2 }
   0xb   :  { %9 = vsyncpa [#allocation3], 0  ;;  %v24_v7 = vld [vmem:[%s899_s1 + $0x18] sm:$0xff]  ;;  %v25_v8 = vld [vmem:[%s899_s1 + $0x20] sm:$0xff]  ;;  %v674_v29 = vmov 0.0|0.0   ;;  %vm379_vm2 = vcmask 588800  }
   0xc   :  { %v26_v9 = vld [vmem:[%s899_s1 + $0x28] sm:$0xff]  ;;  %v27_v10 = vld [vmem:[%s899_s1 + $0x30] sm:$0xff]  ;;  %v28_v11 = vld [vmem:[%s899_s1 + $0x38] sm:$0xff]  ;;  %603 = vmatprep.subr.bf16.mxu1 %v674_v29  ;;  %v675_v33 = vmov 0  }
   0xd   :  { %535 = vmatmul.mubr.msk.f32.gmra.mrb[4].mxu0 %vm46_vm1, %v23_v6  ;;  %v29_v12 = vld [vmem:[%s899_s1 + $0x40] sm:$0xff]  ;;  %v30_v13 = vld [vmem:[%s899_s1 + $0x48] sm:$0xff]  ;;  %v31_v14 = vld [vmem:[%s899_s1 + $0x50] sm:$0xff]  ;;  %647 = vset.pattern.permute.xlu0 %v675_v33 }
   0xe   :  { %537 = vmatprep.mubr.msk.f32.mxu0 %vm673_vm0, %v672_v2  ;;  %v32_v15 = vld [vmem:[%s899_s1 + $0x58] sm:$0xff]  ;;  %v33_v16 = vld [vmem:[%s899_s1 + $0x60] sm:$0xff]  ;;  %v34_v17 = vld [vmem:[%s899_s1 + $0x68] sm:$0xff] }
   0xf   :  { %v35_v18 = vld [vmem:[%s899_s1 + $0x70] sm:$0xff]  ;;  %v36_v19 = vld [vmem:[%s899_s1 + $0x78] sm:$0xff]  ;;  %v37_v20 = vld [vmem:[%s899_s1 + $0x80] sm:$0xff] }
  0x10   :  { %v38_v21 = vld [vmem:[%s899_s1 + $0x88] sm:$0xff]  ;;  %v39_v22 = vld [vmem:[%s899_s1 + $0x90] sm:$0xff]  ;;  %v40_v23 = vld [vmem:[%s899_s1 + $0x98] sm:$0xff] }
  0x11   :  { %538 = vmatmul.mubr.msk.f32.gmra.mrb[6].mxu0 %vm46_vm1, %v24_v7  ;;  %v41_v24 = vld [vmem:[%s899_s1 + $0xa0] sm:$0xff]  ;;  %v42_v25 = vld [vmem:[%s899_s1 + $0xa8] sm:$0xff]  ;;  %v43_v26 = vld [vmem:[%s899_s1 + $0xb0] sm:$0xff] }
  0x12   :  { %540 = vmatprep.mubr.msk.f32.mxu0 %vm673_vm0, %v672_v2  ;;  %v44_v27 = vld [vmem:[%s899_s1 + $0xb8] sm:$0xff]  ;;  %v45_v28 = vld [vmem:[%s899_s1 + $0xc0] sm:$0xff]  ;;  %s677_s1 = smov [#allocation2]  }
  0x13   :  { %v866_v30 = vld.sshfl [vmem:[%s900_s2] sm:$0x33 pattern:$0x76325410]  ;;  %s462_s2 = sshll.u32 %s677_s1, 4  ;;  %s463_s2 = int_to_ptr.vmem [resolvable:$true] %s462_s2 }
  0x14   :  { %v377_v31 = vcombine.high %v866_v30, %v866_v30  ;;  %v363_v32 = vld [vmem:[%s901_s3] sm:$0x3]  ;;  %s648_s3 = scalar_lea.vmem %s463_s2, 256  ;;  %p653_p1 = scmp.lt.s32.totalorder %s463_s2, %s463_s2 }
  0x15   :  { %541 = vmatmul.mubr.msk.f32.gmra.mrb[8].mxu0 %vm46_vm1, %v25_v8  ;;  %366 = vperm.xlu0 %647, %v363_v32   ;;  %p649_p0 = scmp.ne.s32.totalorder %s463_s2, %s648_s3  ;;  %p654_p2 = scmp.lt.s32.totalorder %s648_s3, %s648_s3 }
  0x16   :  { %543 = vmatprep.mubr.msk.f32.mxu0 %vm673_vm0, %v672_v2  ;;  %499 = vmatprep.mubr.msk.f32.mxu1 %vm379_vm2, %v377_v31 }
  0x17   :  { %p655_p3 = por %p654_p2, %p653_p1 }
  0x19   :  { %544 = vmatmul.mubr.msk.f32.gmra.mrb[10].mxu0 %vm46_vm1, %v26_v9  ;;  %p656_p4 = pnand %p655_p3, %p649_p0 }
  0x1a   :  { %546 = vmatprep.mubr.msk.f32.mxu0 %vm673_vm0, %v672_v2 }
  0x1d   :  { %547 = vmatmul.mubr.msk.f32.gmra.mrb[12].mxu0 %vm46_vm1, %v27_v10 }
  0x1e   :  { %549 = vmatprep.mubr.msk.f32.mxu0 %vm673_vm0, %v672_v2 }
  0x21   :  { %550 = vmatmul.mubr.msk.f32.gmra.mrb[14].mxu0 %vm46_vm1, %v28_v11 }
  0x22   :  { %552 = vmatprep.mubr.msk.f32.mxu0 %vm673_vm0, %v672_v2 }
  0x25   :  { %553 = vmatmul.mubr.msk.f32.gmra.mrb[16].mxu0 %vm46_vm1, %v29_v12 }
  0x26   :  { %555 = vmatprep.mubr.msk.f32.mxu0 %vm673_vm0, %v672_v2 }
  0x29   :  { %556 = vmatmul.mubr.msk.f32.gmra.mrb[18].mxu0 %vm46_vm1, %v30_v13 }
  0x2a   :  { %558 = vmatprep.mubr.msk.f32.mxu0 %vm673_vm0, %v672_v2 }
  0x2d   :  { %559 = vmatmul.mubr.msk.f32.gmra.mrb[20].mxu0 %vm46_vm1, %v31_v14 }
  0x2e   :  { %561 = vmatprep.mubr.msk.f32.mxu0 %vm673_vm0, %v672_v2 }
  0x31   :  { %562 = vmatmul.mubr.msk.f32.gmra.mrb[22].mxu0 %vm46_vm1, %v32_v15 }
  0x32   :  { %564 = vmatprep.mubr.msk.f32.mxu0 %vm673_vm0, %v672_v2 }
  0x35   :  { %565 = vmatmul.mubr.msk.f32.gmra.mrb[24].mxu0 %vm46_vm1, %v33_v16 }
  0x36   :  { %567 = vmatprep.mubr.msk.f32.mxu0 %vm673_vm0, %v672_v2 }
  0x39   :  { %568 = vmatmul.mubr.msk.f32.gmra.mrb[26].mxu0 %vm46_vm1, %v34_v17 }
  0x3a   :  { %570 = vmatprep.mubr.msk.f32.mxu0 %vm673_vm0, %v672_v2 }
  0x3d   :  { %571 = vmatmul.mubr.msk.f32.gmra.mrb[28].mxu0 %vm46_vm1, %v35_v18 }
  0x3e   :  { %573 = vmatprep.mubr.msk.f32.mxu0 %vm673_vm0, %v672_v2 }
  0x41   :  { %574 = vmatmul.mubr.msk.f32.gmra.mrb[30].mxu0 %vm46_vm1, %v36_v19 }
  0x42   :  { %576 = vmatprep.mubr.msk.f32.mxu0 %vm673_vm0, %v672_v2 }
  0x45   :  { %577 = vmatmul.mubr.msk.f32.gmra.mrb[32].mxu0 %vm46_vm1, %v37_v20 }
  0x46   :  { %579 = vmatprep.mubr.msk.f32.mxu0 %vm673_vm0, %v672_v2 }
  0x49   :  { %580 = vmatmul.mubr.msk.f32.gmra.mrb[34].mxu0 %vm46_vm1, %v38_v21 }
  0x4a   :  { %582 = vmatprep.mubr.msk.f32.mxu0 %vm673_vm0, %v672_v2 }
  0x4d   :  { %583 = vmatmul.mubr.msk.f32.gmra.mrb[36].mxu0 %vm46_vm1, %v39_v22 }
  0x4e   :  { %585 = vmatprep.mubr.msk.f32.mxu0 %vm673_vm0, %v672_v2 }
  0x51   :  { %586 = vmatmul.mubr.msk.f32.gmra.mrb[38].mxu0 %vm46_vm1, %v40_v23 }
  0x52   :  { %588 = vmatprep.mubr.msk.f32.mxu0 %vm673_vm0, %v672_v2 }
  0x55   :  { %589 = vmatmul.mubr.msk.f32.gmra.mrb[40].mxu0 %vm46_vm1, %v41_v24 }
  0x56   :  { %591 = vmatprep.mubr.msk.f32.mxu0 %vm673_vm0, %v672_v2 }
  0x59   :  { %592 = vmatmul.mubr.msk.f32.gmra.mrb[42].mxu0 %vm46_vm1, %v42_v25 }
  0x5a   :  { %594 = vmatprep.mubr.msk.f32.mxu0 %vm673_vm0, %v672_v2 }
  0x5d   :  { %595 = vmatmul.mubr.msk.f32.gmra.mrb[44].mxu0 %vm46_vm1, %v43_v26 }
  0x5e   :  { %597 = vmatprep.mubr.msk.f32.mxu0 %vm673_vm0, %v672_v2 }
  0x61   :  { %598 = vmatmul.mubr.msk.f32.gmra.mrb[46].mxu0 %vm46_vm1, %v44_v27 }
  0x62   :  { %600 = vmatprep.mubr.msk.f32.mxu0 %vm673_vm0, %v672_v2 }
  0x65   :  { %601 = vmatmul.mubr.msk.f32.gmra.mrb[48].mxu0 %vm46_vm1, %v45_v28 }
  0xd8   :  { %v188_v34 = vpop.f32.mrb[0].mxu0 }
  0xd9   :  { %v530_v35 = vpop.f32.mrb[1].mxu0  ;;  %v312_v36 = vmax.f32 %v188_v34, 0.0 }
  0xdb   :  { %v337_v40 = vmin.f32 %v312_v36, 6.0 }
  0xdc   :  { %v193_v37 = vpop.f32.mrb[2].mxu0 }
  0xdd   :  { %v313_v38 = vmax.f32 %v193_v37, 0.0  ;;  %v533_v39 = vpop.f32.mrb[3].mxu0 }
  0xdf   :  { %v338_v41 = vmin.f32 %v313_v38, 6.0 }
  0xe0   :  { %v198_v42 = vpop.f32.mrb[4].mxu0 }
  0xe1   :  { %v536_v43 = vpop.f32.mrb[5].mxu0  ;;  %v604_v44 = vpack.c.bf16 %v338_v41, %v337_v40  ;;  %v314_v45 = vmax.f32 %v198_v42, 0.0 }
  0xe3   :  { %605 = vmatpush1.bf16.msra.mxu1 %v604_v44  ;;  %v339_v49 = vmin.f32 %v314_v45, 6.0 }
  0xe4   :  { %v203_v46 = vpop.f32.mrb[6].mxu0  ;;  %606 = vmatprep.subr.bf16.mxu1 %v674_v29 }
  0xe5   :  { %v315_v47 = vmax.f32 %v203_v46, 0.0  ;;  %v539_v48 = vpop.f32.mrb[7].mxu0 }
  0xe7   :  { %v340_v50 = vmin.f32 %v315_v47, 6.0 }
  0xe8   :  { %v208_v51 = vpop.f32.mrb[8].mxu0 }
  0xe9   :  { %v607_v52 = vpack.c.bf16 %v340_v50, %v339_v49  ;;  %v542_v53 = vpop.f32.mrb[9].mxu0  ;;  %v316_v54 = vmax.f32 %v208_v51, 0.0 }
  0xeb   :  { %608 = vmatpush1.bf16.msra.mxu1 %v607_v52  ;;  %v341_v58 = vmin.f32 %v316_v54, 6.0 }
  0xec   :  { %v213_v55 = vpop.f32.mrb[10].mxu0  ;;  %609 = vmatprep.subr.bf16.mxu1 %v674_v29 }
  0xed   :  { %v317_v56 = vmax.f32 %v213_v55, 0.0  ;;  %v545_v57 = vpop.f32.mrb[11].mxu0 }
  0xef   :  { %v342_v59 = vmin.f32 %v317_v56, 6.0 }
  0xf0   :  { %v218_v60 = vpop.f32.mrb[12].mxu0 }
  0xf1   :  { %v610_v61 = vpack.c.bf16 %v342_v59, %v341_v58  ;;  %v548_v62 = vpop.f32.mrb[13].mxu0  ;;  %v318_v63 = vmax.f32 %v218_v60, 0.0 }
  0xf3   :  { %611 = vmatpush1.bf16.msra.mxu1 %v610_v61  ;;  %v343_v4 = vmin.f32 %v318_v63, 6.0 }
  0xf4   :  { %v223_v0 = vpop.f32.mrb[14].mxu0  ;;  %612 = vmatprep.subr.bf16.mxu1 %v674_v29 }
  0xf5   :  { %v319_v1 = vmax.f32 %v223_v0, 0.0  ;;  %v551_v3 = vpop.f32.mrb[15].mxu0 }
  0xf7   :  { %v344_v5 = vmin.f32 %v319_v1, 6.0 }
  0xf8   :  { %v228_v6 = vpop.f32.mrb[16].mxu0 }
  0xf9   :  { %v613_v7 = vpack.c.bf16 %v344_v5, %v343_v4  ;;  %v554_v8 = vpop.f32.mrb[17].mxu0  ;;  %v320_v9 = vmax.f32 %v228_v6, 0.0 }
  0xfb   :  { %614 = vmatpush1.bf16.msra.mxu1 %v613_v7  ;;  %v345_v13 = vmin.f32 %v320_v9, 6.0 }
  0xfc   :  { %v233_v10 = vpop.f32.mrb[18].mxu0  ;;  %615 = vmatprep.subr.bf16.mxu1 %v674_v29 }
  0xfd   :  { %v321_v11 = vmax.f32 %v233_v10, 0.0  ;;  %v557_v12 = vpop.f32.mrb[19].mxu0 }
  0xff   :  { %v346_v14 = vmin.f32 %v321_v11, 6.0 }
 0x100   :  { %v238_v15 = vpop.f32.mrb[20].mxu0 }
 0x101   :  { %v616_v16 = vpack.c.bf16 %v346_v14, %v345_v13  ;;  %v560_v17 = vpop.f32.mrb[21].mxu0  ;;  %v322_v18 = vmax.f32 %v238_v15, 0.0 }
 0x103   :  { %617 = vmatpush1.bf16.msra.mxu1 %v616_v16  ;;  %v347_v22 = vmin.f32 %v322_v18, 6.0 }
 0x104   :  { %v243_v19 = vpop.f32.mrb[22].mxu0  ;;  %618 = vmatprep.subr.bf16.mxu1 %v674_v29 }
 0x105   :  { %v323_v20 = vmax.f32 %v243_v19, 0.0  ;;  %v563_v21 = vpop.f32.mrb[23].mxu0 }
 0x107   :  { %v348_v23 = vmin.f32 %v323_v20, 6.0 }
 0x108   :  { %v248_v24 = vpop.f32.mrb[24].mxu0 }
 0x109   :  { %v619_v25 = vpack.c.bf16 %v348_v23, %v347_v22  ;;  %v566_v26 = vpop.f32.mrb[25].mxu0  ;;  %v324_v27 = vmax.f32 %v248_v24, 0.0  ;;  %v676_v22 = vmov 1.0   ;;  %v367_v23 = vpop.permute.xlu0 %366 }
 0x10a   :  { %456 = vst [vmem:[#allocation2 + $0x8] sm:$0x1] %v676_v22 }
 0x10b   :  { %620 = vmatpush1.bf16.msra.mxu1 %v619_v25  ;;  %v349_v33 = vmin.f32 %v324_v27, 6.0 }
 0x10c   :  { %v253_v28 = vpop.f32.mrb[26].mxu0  ;;  %621 = vmatprep.subr.bf16.mxu1 %v674_v29 }
 0x10d   :  { %v325_v31 = vmax.f32 %v253_v28, 0.0  ;;  %v569_v32 = vpop.f32.mrb[27].mxu0 }
 0x10f   :  { %v350_v34 = vmin.f32 %v325_v31, 6.0 }
 0x110   :  { %v258_v35 = vpop.f32.mrb[28].mxu0 }
 0x111   :  { %v622_v36 = vpack.c.bf16 %v350_v34, %v349_v33  ;;  %v572_v37 = vpop.f32.mrb[29].mxu0  ;;  %v326_v38 = vmax.f32 %v258_v35, 0.0 }
 0x113   :  { %623 = vmatpush1.bf16.msra.mxu1 %v622_v36  ;;  %v351_v42 = vmin.f32 %v326_v38, 6.0 }
 0x114   :  { %v263_v39 = vpop.f32.mrb[30].mxu0  ;;  %624 = vmatprep.subr.bf16.mxu1 %v674_v29 }
 0x115   :  { %v327_v40 = vmax.f32 %v263_v39, 0.0  ;;  %v575_v41 = vpop.f32.mrb[31].mxu0 }
 0x117   :  { %v352_v43 = vmin.f32 %v327_v40, 6.0 }
 0x118   :  { %v268_v44 = vpop.f32.mrb[32].mxu0 }
 0x119   :  { %v625_v45 = vpack.c.bf16 %v352_v43, %v351_v42  ;;  %v578_v46 = vpop.f32.mrb[33].mxu0  ;;  %v328_v47 = vmax.f32 %v268_v44, 0.0 }
 0x11b   :  { %626 = vmatpush1.bf16.msra.mxu1 %v625_v45  ;;  %v353_v51 = vmin.f32 %v328_v47, 6.0 }
 0x11c   :  { %v273_v48 = vpop.f32.mrb[34].mxu0  ;;  %627 = vmatprep.subr.bf16.mxu1 %v674_v29 }
 0x11d   :  { %v329_v49 = vmax.f32 %v273_v48, 0.0  ;;  %v581_v50 = vpop.f32.mrb[35].mxu0 }
 0x11f   :  { %v354_v52 = vmin.f32 %v329_v49, 6.0 }
 0x120   :  { %v278_v53 = vpop.f32.mrb[36].mxu0 }
 0x121   :  { %v628_v54 = vpack.c.bf16 %v354_v52, %v353_v51  ;;  %v584_v55 = vpop.f32.mrb[37].mxu0  ;;  %v330_v56 = vmax.f32 %v278_v53, 0.0 }
 0x123   :  { %629 = vmatpush1.bf16.msra.mxu1 %v628_v54  ;;  %v355_v60 = vmin.f32 %v330_v56, 6.0 }
 0x124   :  { %v283_v57 = vpop.f32.mrb[38].mxu0  ;;  %630 = vmatprep.subr.bf16.mxu1 %v674_v29 }
 0x125   :  { %v331_v58 = vmax.f32 %v283_v57, 0.0  ;;  %v587_v59 = vpop.f32.mrb[39].mxu0 }
 0x127   :  { %v356_v61 = vmin.f32 %v331_v58, 6.0 }
 0x128   :  { %v288_v62 = vpop.f32.mrb[40].mxu0 }
 0x129   :  { %v631_v63 = vpack.c.bf16 %v356_v61, %v355_v60  ;;  %v590_v0 = vpop.f32.mrb[41].mxu0  ;;  %v332_v1 = vmax.f32 %v288_v62, 0.0 }
 0x12b   :  { %632 = vmatpush1.bf16.msra.mxu1 %v631_v63  ;;  %v357_v6 = vmin.f32 %v332_v1, 6.0 }
 0x12c   :  { %v293_v3 = vpop.f32.mrb[42].mxu0  ;;  %633 = vmatprep.subr.bf16.mxu1 %v674_v29 }
 0x12d   :  { %v333_v4 = vmax.f32 %v293_v3, 0.0  ;;  %v593_v5 = vpop.f32.mrb[43].mxu0 }
 0x12f   :  { %v358_v7 = vmin.f32 %v333_v4, 6.0 }
 0x130   :  { %v298_v8 = vpop.f32.mrb[44].mxu0 }
 0x131   :  { %v634_v9 = vpack.c.bf16 %v358_v7, %v357_v6  ;;  %v596_v10 = vpop.f32.mrb[45].mxu0  ;;  %v334_v11 = vmax.f32 %v298_v8, 0.0 }
 0x133   :  { %635 = vmatpush1.bf16.msra.mxu1 %v634_v9  ;;  %v359_v15 = vmin.f32 %v334_v11, 6.0 }
 0x134   :  { %v303_v12 = vpop.f32.mrb[46].mxu0  ;;  %636 = vmatprep.subr.bf16.mxu1 %v674_v29 }
 0x135   :  { %v335_v13 = vmax.f32 %v303_v12, 0.0  ;;  %v599_v14 = vpop.f32.mrb[47].mxu0 }
 0x137   :  { %v360_v16 = vmin.f32 %v335_v13, 6.0 }
 0x138   :  { %v308_v17 = vpop.f32.mrb[48].mxu0 }
 0x139   :  { %v637_v18 = vpack.c.bf16 %v360_v16, %v359_v15  ;;  %v336_v19 = vmax.f32 %v308_v17, 0.0  ;;  %v602_v20 = vpop.f32.mrb[49].mxu0 }
 0x13b   :  { %v361_v21 = vmin.f32 %v336_v19, 6.0  ;;  %638 = vmatpush1.bf16.msra.mxu1 %v637_v18 }
 0x13c   :  { %430 = vmatprep.subr.mxu1 %v672_v2 }
 0x13f   :  { %431 = vmatpush1.msra.mxu1 %v361_v21 }
 0x140   :  { %447 = vmatmul.mubr.f32.vlgmr.msra.gmra.mrb[0].mxu1 %v866_v30 }
 0x213   :  { %v448_v24 = vpop.f32.mrb[0].mxu1 }
 0x214   :  { %v449_v29 = vadd.f32 %v448_v24, %v367_v23  ;;  %v450_v25 = vpop.f32.mrb[1].mxu1 }
 0x216   :  { %v452_v26 = vmax.f32 %v449_v29, 0.0 }
 0x218   :  { %v453_v27 = vmin.f32 %v452_v26, 6.0 }
 0x21a   :  { %455 = vst [vmem:[#allocation2 + $0x6] sm:$0x3] %v453_v27 }
 0x21b   :  { %659 = shalt.err (!%p656_p4)
}
 0x21c   :  { %s660_s0 = scalar_lea.hbm %s902_s4, 256 }
 0x21d   :  { %p661_p5 = scmp.ne.s32.totalorder %s902_s4, %s660_s0  ;;  %p664_p6 = scmp.lt.u32.totalorder %s660_s0, %s902_s4 }
 0x21f   :  { %p666_p7 = pnand %p664_p6, %p661_p5 }
 0x221   :  { %669 = shalt.err (!%p666_p7)
}
 0x222   :  { %s678_s25 = smov 128   ;;  %s679_s26 = smov 8  }
 0x223   :  { %468 = dma.vmem_to_hbm [thread:$0]  %s463_s2, 256, %s902_s4, [#allocation3], %s678_s25, %s678_s25, %s679_s26  }
 0x224   :  { %670 = dma.done.wait [#allocation3], 256  }
 0x225   :  { %671 = vsyncadd [#allocation3], 4294967040 }
 0x226   :  { %472 = vsyncpa [#allocation3], 1 }

</bundles_post_ra>
